<compile_context>
chip_gen: v7x
topology: tpu7x:2x2x1
jax: 0.10.0
libtpu: 0.0.40
codegen_flags: <defaults>
</compile_context>

<pallas_src>
import math

import jax
import jax.numpy as jnp
import numpy as np
from jax.experimental import pallas as pl
from jax.experimental.pallas import tpu as pltpu

_LANE = 128
_SUBLANE = 8


def _round_up(a, m):
    return -(-a // m) * m


def _make_component_logpmf(n, p):
    """Builds f(k) = Binomial(n, p).log_prob(k) for integer-valued f32 k in [0, n]."""
    if not (0.0 < p < 1.0):
        # TODO(synk): degenerate p in {0, 1} (mean in {0, ss_dim}) needs the -inf LUT path.
        raise ValueError("SimpleBin Pallas kernel requires 0 < mean[c] < ss_dim")
    slope = math.log(p) - math.log1p(-p)                 # log(p / (1 - p))
    base = math.lgamma(n + 1.0) + n * math.log1p(-p)      # k-independent terms
    half = n // 2
    # Symmetric part with the constant folded in: h[m] = base - lgamma(m+1) - lgamma(n-m+1)
    h = [base - math.lgamma(m + 1.0) - math.lgamma(n - m + 1.0)
         for m in range(half + 1)]

    def logpmf(k):
        m = jnp.minimum(k, jnp.float32(n) - k)
        g = jnp.full_like(k, jnp.float32(h[0]))
        for j in range(1, half + 1):                      # ~half cmp+select pairs
            g = jnp.where(m >= jnp.float32(j - 0.5), jnp.float32(h[j]), g)
        return k * jnp.float32(slope) + g

    return logpmf


def make_simple_bin_kernel(ss_dim, mean):
    n = int(ss_dim)
    logpmf0 = _make_component_logpmf(n, float(mean[0]) / n)
    logpmf1 = _make_component_logpmf(n, float(mean[1]) / n)

    def kernel(x_ref, o_ref):
        # x_ref: (br, 256) f32, lanes interleaved [x0, x1, x0, x1, ...]
        # o_ref: (br, 128) f32
        x = x_ref[...]
        # De-interleave via two 0/1 selection matmuls on the idle MXU slot:
        #   x0[:, j] = x[:, 2j],  x1[:, j] = x[:, 2j+1]   (exact for integer counts).
        i_idx = jax.lax.broadcasted_iota(jnp.int32, (2 * _LANE, _LANE), 0)
        j_idx = jax.lax.broadcasted_iota(jnp.int32, (2 * _LANE, _LANE), 1)
        one = jnp.float32(1.0)
        zero = jnp.float32(0.0)
        s_even = jnp.where(i_idx == 2 * j_idx, one, zero)
        s_odd = jnp.where(i_idx == 2 * j_idx + 1, one, zero)
        x0 = jnp.dot(x, s_even, preferred_element_type=jnp.float32)
        x1 = jnp.dot(x, s_odd, preferred_element_type=jnp.float32)
        o_ref[...] = logpmf0(x0) + logpmf1(x1)

    return kernel


def simple_bin_forward(x, ss_dim, mean, block_rows=4096, min_block_rows=512):
    """x: (B, 2) float32 integer counts in [0, ss_dim]. Returns (B,) float32."""
    B = x.shape[0]
    xf = x.astype(jnp.float32)

    # One output element per batch item; 128 items per lane-row.
    rows = _round_up(-(-B // _LANE), _SUBLANE)

    max_br = max(_SUBLANE, (int(block_rows) // _SUBLANE) * _SUBLANE)
    min_br = max(_SUBLANE, min(int(min_block_rows), max_br))
    if rows <= min_br:
        br = rows                                          # tiny batch: one grid step
    else:
        steps = max(2, -(-rows // max_br))                 # respect the VMEM cap
        steps = max(steps, min(4, rows // min_br))         # prefer >=4 steps (v7x megacore)
        br = min(max_br, _round_up(-(-rows // steps), _SUBLANE))
    padded_rows = _round_up(rows, br)
    b_padded = padded_rows * _LANE

    # Single pad of the interleaved slab (elided when B is aligned); the reshape
    # is free (row-major contiguous, 256 = 128 batch items x 2 components).
    xp = jnp.pad(xf, ((0, b_padded - B), (0, 0))).reshape(padded_rows, 2 * _LANE)

    kernel = make_simple_bin_kernel(ss_dim, mean)
    out = pl.pallas_call(
        kernel,
        out_shape=jax.ShapeDtypeStruct((padded_rows, _LANE), jnp.float32),
        grid=(padded_rows // br,),
        in_specs=[pl.BlockSpec((br, 2 * _LANE), lambda i: (i, 0))],
        out_specs=pl.BlockSpec((br, _LANE), lambda i: (i, 0)),
        compiler_params=pltpu.CompilerParams(
            dimension_semantics=("parallel",),
            vmem_limit_bytes=32 << 20),
    )(xp)
    # Padded tail lanes hold garbage never read back; when B is tile-aligned
    # this reshape+slice is a no-op.
    return out.reshape(-1)[:B]


def ref_forward_np(x, ss_dim, mean):
    # Pure-NumPy float64 reference (PyTorch Binomial.log_prob formula).
    xn = np.asarray(x, dtype=np.float64)
    n = float(ss_dim)
    lg = np.vectorize(math.lgamma)
    out = np.zeros(xn.shape[0], dtype=np.float64)
    for c in range(2):
        p = float(mean[c]) / ss_dim
        k = xn[:, c]
        out += (math.lgamma(n + 1.0) - lg(k + 1.0) - lg(n - k + 1.0)
                + k * math.log(p) + (n - k) * math.log1p(-p))
    return out.astype(np.float32)


if __name__ == "__main__":
    ss_dim = 10
    mean = (3.0, 6.0)
    key = jax.random.PRNGKey(0)

    # Small batch consistent with the module (Binomial support = 0..ss_dim).
    B = 8
    x = jax.random.randint(key, (B, 2), 0, ss_dim + 1).astype(jnp.float32)
    out = jax.block_until_ready(simple_bin_forward(x, ss_dim, mean))
    assert out.shape == (B,)
    np.testing.assert_allclose(np.asarray(out), ref_forward_np(x, ss_dim, mean),
                               rtol=1e-5, atol=1e-5)

    # Exercise the multi-step (grid > 1) tiled path with a non-aligned B.
    B2 = 2000
    k2 = jax.random.split(key)[0]
    x2 = jax.random.randint(k2, (B2, 2), 0, ss_dim + 1).astype(jnp.float32)
    out2 = jax.block_until_ready(
        simple_bin_forward(x2, ss_dim, mean, block_rows=8, min_block_rows=8))
    assert out2.shape == (B2,)
    np.testing.assert_allclose(np.asarray(out2), ref_forward_np(x2, ss_dim, mean),
                               rtol=1e-5, atol=1e-5)

    print("KERNEL_OK")
</pallas_src>

<mosaic_0001>
module attributes {stable_mosaic.version = 11 : i64} {
  func.func @kernel(%arg0: i32, %arg1: memref<8x256xf32, #tpu.memory_space<vmem>>, %arg2: memref<8x128xf32, #tpu.memory_space<vmem>>) attributes {dimension_semantics = [#tpu.dimension_semantics<parallel>], iteration_bounds = array<i64: 1>, scalar_prefetch = 0 : i64, scratch_operands = 0 : i64, tpu.core_type = #tpu.core_type<tc>, window_params = [{transform_indices = @transform_0, window_bounds = array<i64: 8, 256>}, {transform_indices = @transform_1, window_bounds = array<i64: 8, 128>}]} {
    %c0 = arith.constant 0 : index
    %c0_0 = arith.constant 0 : index
    %0 = vector.load %arg1[%c0, %c0_0] : memref<8x256xf32, #tpu.memory_space<vmem>>, vector<8x256xf32>
    %1 = tpu.iota {dimensions = array<i32: 0>} : vector<256x128xi32>
    %2 = tpu.iota {dimensions = array<i32: 1>} : vector<256x128xi32>
    %c2_i32 = arith.constant 2 : i32
    %3 = vector.broadcast %c2_i32 : i32 to vector<256x128xi32>
    %4 = arith.muli %3, %2 : vector<256x128xi32>
    %5 = arith.cmpi eq, %1, %4 : vector<256x128xi32>
    %cst = arith.constant 1.000000e+00 : f32
    %cst_1 = arith.constant 0.000000e+00 : f32
    %6 = vector.broadcast %cst : f32 to vector<256x128xf32>
    %7 = vector.broadcast %cst_1 : f32 to vector<256x128xf32>
    %8 = arith.select %5, %6, %7 : vector<256x128xi1>, vector<256x128xf32>
    %c2_i32_2 = arith.constant 2 : i32
    %9 = vector.broadcast %c2_i32_2 : i32 to vector<256x128xi32>
    %10 = arith.muli %9, %2 : vector<256x128xi32>
    %c1_i32 = arith.constant 1 : i32
    %11 = vector.broadcast %c1_i32 : i32 to vector<256x128xi32>
    %12 = arith.addi %10, %11 : vector<256x128xi32>
    %13 = arith.cmpi eq, %1, %12 : vector<256x128xi32>
    %cst_3 = arith.constant 1.000000e+00 : f32
    %cst_4 = arith.constant 0.000000e+00 : f32
    %14 = vector.broadcast %cst_3 : f32 to vector<256x128xf32>
    %15 = vector.broadcast %cst_4 : f32 to vector<256x128xf32>
    %16 = arith.select %13, %14, %15 : vector<256x128xi1>, vector<256x128xf32>
    %cst_5 = arith.constant dense<0.000000e+00> : vector<8x128xf32>
    %17 = tpu.matmul %0, %8, %cst_5 {dimension_numbers = #tpu.dot_dimension_numbers<[1], [0], [0], [1], [0, 0, 1, 1], [], []>} : vector<8x256xf32>, vector<256x128xf32>, vector<8x128xf32> -> vector<8x128xf32>
    %cst_6 = arith.constant dense<0.000000e+00> : vector<8x128xf32>
    %18 = tpu.matmul %0, %16, %cst_6 {dimension_numbers = #tpu.dot_dimension_numbers<[1], [0], [0], [1], [0, 0, 1, 1], [], []>} : vector<8x256xf32>, vector<256x128xf32>, vector<8x128xf32> -> vector<8x128xf32>
    %cst_7 = arith.constant 1.000000e+01 : f32
    %19 = vector.broadcast %cst_7 : f32 to vector<8x128xf32>
    %20 = arith.subf %19, %17 : vector<8x128xf32>
    %21 = arith.minimumf %17, %20 : vector<8x128xf32>
    %cst_8 = arith.constant -3.56674933 : f32
    %22 = vector.broadcast %cst_8 : f32 to vector<8x128xf32>
    %cst_9 = arith.constant 5.000000e-01 : f32
    %23 = vector.broadcast %cst_9 : f32 to vector<8x128xf32>
    %24 = arith.cmpf oge, %21, %23 : vector<8x128xf32>
    %cst_10 = arith.constant -1.26416433 : f32
    %25 = vector.broadcast %cst_10 : f32 to vector<8x128xf32>
    %26 = arith.select %24, %25, %22 : vector<8x128xi1>, vector<8x128xf32>
    %cst_11 = arith.constant 1.500000e+00 : f32
    %27 = vector.broadcast %cst_11 : f32 to vector<8x128xf32>
    %28 = arith.cmpf oge, %21, %27 : vector<8x128xf32>
    %cst_12 = arith.constant 0.239913046 : f32
    %29 = vector.broadcast %cst_12 : f32 to vector<8x128xf32>
    %30 = arith.select %28, %29, %26 : vector<8x128xi1>, vector<8x128xf32>
    %cst_13 = arith.constant 2.500000e+00 : f32
    %31 = vector.broadcast %cst_13 : f32 to vector<8x128xf32>
    %32 = arith.cmpf oge, %21, %31 : vector<8x128xf32>
    %cst_14 = arith.constant 1.22074234 : f32
    %33 = vector.broadcast %cst_14 : f32 to vector<8x128xf32>
    %34 = arith.select %32, %33, %30 : vector<8x128xi1>, vector<8x128xf32>
    %cst_15 = arith.constant 3.500000e+00 : f32
    %35 = vector.broadcast %cst_15 : f32 to vector<8x128xf32>
    %36 = arith.cmpf oge, %21, %35 : vector<8x128xf32>
    %cst_16 = arith.constant 1.78035808 : f32
    %37 = vector.broadcast %cst_16 : f32 to vector<8x128xf32>
    %38 = arith.select %36, %37, %34 : vector<8x128xi1>, vector<8x128xf32>
    %cst_17 = arith.constant 4.500000e+00 : f32
    %39 = vector.broadcast %cst_17 : f32 to vector<8x128xf32>
    %40 = arith.cmpf oge, %21, %39 : vector<8x128xf32>
    %cst_18 = arith.constant 1.96267962 : f32
    %41 = vector.broadcast %cst_18 : f32 to vector<8x128xf32>
    %42 = arith.select %40, %41, %38 : vector<8x128xi1>, vector<8x128xf32>
    %cst_19 = arith.constant -0.847297847 : f32
    %43 = vector.broadcast %cst_19 : f32 to vector<8x128xf32>
    %44 = arith.mulf %17, %43 : vector<8x128xf32>
    %45 = arith.addf %44, %42 : vector<8x128xf32>
    %cst_20 = arith.constant 1.000000e+01 : f32
    %46 = vector.broadcast %cst_20 : f32 to vector<8x128xf32>
    %47 = arith.subf %46, %18 : vector<8x128xf32>
    %48 = arith.minimumf %18, %47 : vector<8x128xf32>
    %cst_21 = arith.constant -9.1629076 : f32
    %49 = vector.broadcast %cst_21 : f32 to vector<8x128xf32>
    %cst_22 = arith.constant 5.000000e-01 : f32
    %50 = vector.broadcast %cst_22 : f32 to vector<8x128xf32>
    %51 = arith.cmpf oge, %48, %50 : vector<8x128xf32>
    %cst_23 = arith.constant -6.86032199 : f32
    %52 = vector.broadcast %cst_23 : f32 to vector<8x128xf32>
    %53 = arith.select %51, %52, %49 : vector<8x128xi1>, vector<8x128xf32>
    %cst_24 = arith.constant 1.500000e+00 : f32
    %54 = vector.broadcast %cst_24 : f32 to vector<8x128xf32>
    %55 = arith.cmpf oge, %48, %54 : vector<8x128xf32>
    %cst_25 = arith.constant -5.35624504 : f32
    %56 = vector.broadcast %cst_25 : f32 to vector<8x128xf32>
    %57 = arith.select %55, %56, %53 : vector<8x128xi1>, vector<8x128xf32>
    %cst_26 = arith.constant 2.500000e+00 : f32
    %58 = vector.broadcast %cst_26 : f32 to vector<8x128xf32>
    %59 = arith.cmpf oge, %48, %58 : vector<8x128xf32>
    %cst_27 = arith.constant -4.3754158 : f32
    %60 = vector.broadcast %cst_27 : f32 to vector<8x128xf32>
    %61 = arith.select %59, %60, %57 : vector<8x128xi1>, vector<8x128xf32>
    %cst_28 = arith.constant 3.500000e+00 : f32
    %62 = vector.broadcast %cst_28 : f32 to vector<8x128xf32>
    %63 = arith.cmpf oge, %48, %62 : vector<8x128xf32>
    %cst_29 = arith.constant -3.81579971 : f32
    %64 = vector.broadcast %cst_29 : f32 to vector<8x128xf32>
    %65 = arith.select %63, %64, %61 : vector<8x128xi1>, vector<8x128xf32>
    %cst_30 = arith.constant 4.500000e+00 : f32
    %66 = vector.broadcast %cst_30 : f32 to vector<8x128xf32>
    %67 = arith.cmpf oge, %48, %66 : vector<8x128xf32>
    %cst_31 = arith.constant -3.63347816 : f32
    %68 = vector.broadcast %cst_31 : f32 to vector<8x128xf32>
    %69 = arith.select %67, %68, %65 : vector<8x128xi1>, vector<8x128xf32>
    %cst_32 = arith.constant 0.405465096 : f32
    %70 = vector.broadcast %cst_32 : f32 to vector<8x128xf32>
    %71 = arith.mulf %18, %70 : vector<8x128xf32>
    %72 = arith.addf %71, %69 : vector<8x128xf32>
    %73 = arith.addf %45, %72 : vector<8x128xf32>
    %c0_33 = arith.constant 0 : index
    %c0_34 = arith.constant 0 : index
    %74 = vector.load %arg2[%c0_33, %c0_34] : memref<8x128xf32, #tpu.memory_space<vmem>>, vector<8x128xf32>
    tpu.vector_store %arg2[%c0_33, %c0_34], %73 {strides = array<i32>} : memref<8x128xf32, #tpu.memory_space<vmem>>, vector<8x128xf32>,
    return
  }
  func.func @transform_0(%arg0: i32) -> (i32, i32) {
    %c0_i32 = arith.constant 0 : i32
    %c0_i32_0 = arith.constant 0 : i32
    return %arg0, %c0_i32 : i32, i32
  }
  func.func @transform_1(%arg0: i32) -> (i32, i32) {
    %c0_i32 = arith.constant 0 : i32
    %c0_i32_0 = arith.constant 0 : i32
    return %arg0, %c0_i32 : i32, i32
  }
}

</mosaic_0001>

<bundles_post_ra>
// kernel: tpu_custom_call.1
= control target key start
LH: loop header
LB: loop body
LE: loop exit
PB: predicated region body
PF: predicated region fallthrough
CT: control target
= control target key end

     0   :  { %6 = vsyncpa [#allocation3], 0  ;;  %s827_s0 = inlined_call_operand.hbm [shape: f32[8,256], index: 0, kind: input, shape index: {}]   ;;  %s828_s1 = inlined_call_operand.hbm [shape: f32[8,128], index: 1, kind: output, shape index: {}]  }
   0x1   :  { %7 = vsyncpa [#allocation4], 0  ;;  %s624_s6 = smov [#allocation2]   ;;  %s576_s10 = scalar_lea.hbm %s827_s0, 256 }
   0x2   :  { %s14_s7 = sshll.u32 %s624_s6, 4  ;;  %p577_p0 = scmp.ne.s32.totalorder %s827_s0, %s576_s10  ;;  %s15_s7 = int_to_ptr.vmem [resolvable:$true] %s14_s7 }
   0x3   :  { %p580_p1 = scmp.lt.u32.totalorder %s576_s10, %s827_s0 }
   0x5   :  { %p582_p2 = pnand %p580_p1, %p577_p0 }
   0x7   :  { %585 = shalt.err (!%p582_p2)
}
   0x8   :  { %s586_s15 = scalar_lea.vmem %s15_s7, 256  ;;  %p591_p4 = scmp.lt.s32.totalorder %s15_s7, %s15_s7 }
   0x9   :  { %p587_p3 = scmp.ne.s32.totalorder %s15_s7, %s586_s15  ;;  %p592_p5 = scmp.lt.s32.totalorder %s586_s15, %s586_s15 }
   0xb   :  { %p593_p6 = por %p592_p5, %p591_p4 }
   0xd   :  { %p594_p7 = pnand %p593_p6, %p587_p3 }
   0xf   :  { %597 = shalt.err (!%p594_p7)
}
  0x10   :  { %17 = dma.hbm_to_vmem [thread:$0]  %s827_s0, 256, %s15_s7, [#allocation3]   ;;  %v23_v0 = vlaneseq }
  0x11   :  { %620 = dma.done.wait [#allocation3], 256  }
  0x12   :  { %621 = vsyncadd [#allocation3], 4294967040  ;;  %v651_v1 = vshrl.u32 %v23_v0, 7  ;;  %v57_v2 = vand.u32 127, %v23_v0  ;;  %v22_v12 = vld [vmem:[#allocation2 + $0x8] sm:$0xff]  ;;  %v21_v38 = vld [vmem:[#allocation2] sm:$0xff] }
  0x13   :  { %v625_v13 = vmov 1.0|1.0   ;;  %252 = vmatprep.mubr.f32.mxu0 %v22_v12  ;;  %322 = vmatprep.mubr.f32.mxu1 %v22_v12  ;;  %v626_v49 = vmov -3.5667493   ;;  %v627_v54 = vmov -9.162908  }
  0x14   :  { %v40_v3 = vadd.s32 128, %v651_v1  ;;  %v41_v4 = vadd.s32 136, %v651_v1  ;;  %v655_v5 = vmul.u32 2, %v57_v2  ;;  %v25_v6 = vadd.s32 8, %v651_v1  ;;  %s628_s0 = smov [#allocation5]  }
  0x15   :  { %v42_v7 = vadd.s32 144, %v651_v1  ;;  %v43_v8 = vadd.s32 152, %v651_v1  ;;  %v26_v9 = vadd.s32 16, %v651_v1  ;;  %v27_v10 = vadd.s32 24, %v651_v1  ;;  %s364_s18 = sshll.u32 %s628_s0, 4  ;;  %s365_s18 = int_to_ptr.vmem [resolvable:$true] %s364_s18 }
  0x16   :  { %vm75_vm0 = vcmp.eq.s32.totalorder %v40_v3, %v655_v5  ;;  %vm76_vm1 = vcmp.eq.s32.totalorder %v41_v4, %v655_v5  ;;  %vm59_vm2 = vcmp.eq.s32.totalorder %v651_v1, %v655_v5  ;;  %vm60_vm3 = vcmp.eq.s32.totalorder %v25_v6, %v655_v5  ;;  %s598_s19 = scalar_lea.vmem %s365_s18, 128  ;;  %p603_p9 = scmp.lt.s32.totalorder %s365_s18, %s365_s18 }
  0x17   :  { %vm507_vm4 = vmpackc.low %vm76_vm1, %vm75_vm0  ;;  %v668_v11 = vadd.s32 1, %v655_v5  ;;  %vm77_vm5 = vcmp.eq.s32.totalorder %v42_v7, %v655_v5  ;;  %vm78_vm6 = vcmp.eq.s32.totalorder %v43_v8, %v655_v5  ;;  %vm61_vm7 = vcmp.eq.s32.totalorder %v26_v9, %v655_v5  ;;  %p599_p8 = scmp.ne.s32.totalorder %s365_s18, %s598_s19  ;;  %p604_p10 = scmp.lt.s32.totalorder %s598_s19, %s598_s19 }
  0x18   :  { %508 = vmatprep.subr.msk.bf16.mxu0 %vm507_vm4, %v625_v13  ;;  %vm509_vm8 = vmpackc.low %vm60_vm3, %vm59_vm2  ;;  %vm62_vm9 = vcmp.eq.s32.totalorder %v27_v10, %v655_v5  ;;  %v44_v14 = vadd.s32 160, %v651_v1  ;;  %v45_v15 = vadd.s32 168, %v651_v1  ;;  %v28_v16 = vadd.s32 32, %v651_v1 }
  0x19   :  { %510 = vmatpush3.bf16.msk.msra.mxu0 %vm509_vm8, %v625_v13  ;;  %vm140_vm10 = vcmp.eq.s32.totalorder %v40_v3, %v668_v11  ;;  %vm141_vm11 = vcmp.eq.s32.totalorder %v41_v4, %v668_v11  ;;  %vm124_vm12 = vcmp.eq.s32.totalorder %v651_v1, %v668_v11  ;;  %vm125_vm13 = vcmp.eq.s32.totalorder %v25_v6, %v668_v11  ;;  %vm511_vm14 = vmpackc.low %vm78_vm6, %vm77_vm5  ;;  %p605_p11 = por %p604_p10, %p603_p9 }
  0x1a   :  { %vm539_vm15 = vmpackc.low %vm141_vm11, %vm140_vm10  ;;  %512 = vmatprep.subr.msk.bf16.mxu0 %vm511_vm14, %v625_v13  ;;  %vm142_vm0 = vcmp.eq.s32.totalorder %v42_v7, %v668_v11  ;;  %vm143_vm1 = vcmp.eq.s32.totalorder %v43_v8, %v668_v11  ;;  %vm126_vm3 = vcmp.eq.s32.totalorder %v26_v9, %v668_v11  ;;  %vm127_vm4 = vcmp.eq.s32.totalorder %v27_v10, %v668_v11 }
  0x1b   :  { %540 = vmatprep.subr.msk.bf16.mxu1 %vm539_vm15, %v625_v13  ;;  %vm541_vm2 = vmpackc.low %vm125_vm13, %vm124_vm12  ;;  %v29_v17 = vadd.s32 40, %v651_v1  ;;  %vm79_vm6 = vcmp.eq.s32.totalorder %v44_v14, %v655_v5  ;;  %vm80_vm8 = vcmp.eq.s32.totalorder %v45_v15, %v655_v5  ;;  %v46_v18 = vadd.s32 176, %v651_v1  ;;  %p606_p12 = pnand %p605_p11, %p599_p8 }
  0x1c   :  { %542 = vmatpush3.bf16.msk.msra.mxu1 %vm541_vm2, %v625_v13  ;;  %vm513_vm5 = vmpackc.low %vm62_vm9, %vm61_vm7  ;;  %vm63_vm11 = vcmp.eq.s32.totalorder %v28_v16, %v655_v5  ;;  %v47_v19 = vadd.s32 184, %v651_v1  ;;  %v30_v20 = vadd.s32 48, %v651_v1  ;;  %vm144_vm9 = vcmp.eq.s32.totalorder %v44_v14, %v668_v11 }
  0x1d   :  { %514 = vmatpush3.bf16.msk.msra.mxu0 %vm513_vm5, %v625_v13  ;;  %vm543_vm10 = vmpackc.low %vm143_vm1, %vm142_vm0  ;;  %vm64_vm12 = vcmp.eq.s32.totalorder %v29_v17, %v655_v5  ;;  %vm145_vm13 = vcmp.eq.s32.totalorder %v45_v15, %v668_v11  ;;  %v31_v21 = vadd.s32 56, %v651_v1  ;;  %vm128_vm15 = vcmp.eq.s32.totalorder %v28_v16, %v668_v11 }
  0x1e   :  { %544 = vmatprep.subr.msk.bf16.mxu1 %vm543_vm10, %v625_v13  ;;  %vm545_vm7 = vmpackc.low %vm127_vm4, %vm126_vm3  ;;  %vm129_vm0 = vcmp.eq.s32.totalorder %v29_v17, %v668_v11  ;;  %vm81_vm2 = vcmp.eq.s32.totalorder %v46_v18, %v655_v5  ;;  %vm82_vm3 = vcmp.eq.s32.totalorder %v47_v19, %v655_v5  ;;  %v48_v22 = vadd.s32 192, %v651_v1 }
  0x1f   :  { %vm515_vm14 = vmpackc.low %vm80_vm8, %vm79_vm6  ;;  %v49_v23 = vadd.s32 200, %v651_v1  ;;  %vm65_vm5 = vcmp.eq.s32.totalorder %v30_v20, %v655_v5  ;;  %vm66_vm6 = vcmp.eq.s32.totalorder %v31_v21, %v655_v5  ;;  %v32_v24 = vadd.s32 64, %v651_v1 }
  0x20   :  { %546 = vmatpush3.bf16.msk.msra.mxu1 %vm545_vm7, %v625_v13  ;;  %516 = vmatprep.subr.msk.bf16.mxu0 %vm515_vm14, %v625_v13  ;;  %vm517_vm1 = vmpackc.low %vm64_vm12, %vm63_vm11  ;;  %v33_v25 = vadd.s32 72, %v651_v1  ;;  %vm146_vm10 = vcmp.eq.s32.totalorder %v46_v18, %v668_v11  ;;  %vm147_vm11 = vcmp.eq.s32.totalorder %v47_v19, %v668_v11  ;;  %vm130_vm7 = vcmp.eq.s32.totalorder %v30_v20, %v668_v11 }
  0x21   :  { %518 = vmatpush3.bf16.msk.msra.mxu0 %vm517_vm1, %v625_v13  ;;  %vm547_vm4 = vmpackc.low %vm145_vm13, %vm144_vm9  ;;  %vm131_vm9 = vcmp.eq.s32.totalorder %v31_v21, %v668_v11  ;;  %vm83_vm14 = vcmp.eq.s32.totalorder %v48_v22, %v655_v5  ;;  %vm84_vm1 = vcmp.eq.s32.totalorder %v49_v23, %v655_v5  ;;  %v50_v26 = vadd.s32 208, %v651_v1 }
  0x22   :  { %548 = vmatprep.subr.msk.bf16.mxu1 %vm547_vm4, %v625_v13  ;;  %vm549_vm8 = vmpackc.low %vm129_vm0, %vm128_vm15  ;;  %v51_v27 = vadd.s32 216, %v651_v1  ;;  %vm67_vm0 = vcmp.eq.s32.totalorder %v32_v24, %v655_v5  ;;  %v34_v28 = vadd.s32 80, %v651_v1  ;;  %v35_v29 = vadd.s32 88, %v651_v1 }
  0x23   :  { %vm519_vm12 = vmpackc.low %vm82_vm3, %vm81_vm2  ;;  %vm68_vm2 = vcmp.eq.s32.totalorder %v33_v25, %v655_v5  ;;  %vm148_vm4 = vcmp.eq.s32.totalorder %v48_v22, %v668_v11  ;;  %v52_v30 = vadd.s32 224, %v651_v1  ;;  %v53_v31 = vadd.s32 232, %v651_v1 }
  0x24   :  { %550 = vmatpush3.bf16.msk.msra.mxu1 %vm549_vm8, %v625_v13  ;;  %520 = vmatprep.subr.msk.bf16.mxu0 %vm519_vm12, %v625_v13  ;;  %vm521_vm13 = vmpackc.low %vm66_vm6, %vm65_vm5  ;;  %vm149_vm5 = vcmp.eq.s32.totalorder %v49_v23, %v668_v11  ;;  %vm132_vm8 = vcmp.eq.s32.totalorder %v32_v24, %v668_v11  ;;  %vm85_vm12 = vcmp.eq.s32.totalorder %v50_v26, %v655_v5  ;;  %v36_v32 = vadd.s32 96, %v651_v1 }
  0x25   :  { %522 = vmatpush3.bf16.msk.msra.mxu0 %vm521_vm13, %v625_v13  ;;  %vm551_vm15 = vmpackc.low %vm147_vm11, %vm146_vm10  ;;  %vm133_vm10 = vcmp.eq.s32.totalorder %v33_v25, %v668_v11  ;;  %vm86_vm13 = vcmp.eq.s32.totalorder %v51_v27, %v655_v5  ;;  %v37_v33 = vadd.s32 104, %v651_v1  ;;  %v54_v34 = vadd.s32 240, %v651_v1 }
  0x26   :  { %552 = vmatprep.subr.msk.bf16.mxu1 %vm551_vm15, %v625_v13  ;;  %vm553_vm3 = vmpackc.low %vm131_vm9, %vm130_vm7  ;;  %vm69_vm9 = vcmp.eq.s32.totalorder %v34_v28, %v655_v5  ;;  %vm150_vm15 = vcmp.eq.s32.totalorder %v50_v26, %v668_v11  ;;  %v55_v35 = vadd.s32 248, %v651_v1  ;;  %v38_v36 = vadd.s32 112, %v651_v1 }
  0x27   :  { %vm523_vm6 = vmpackc.low %vm84_vm1, %vm83_vm14  ;;  %vm70_vm14 = vcmp.eq.s32.totalorder %v35_v29, %v655_v5  ;;  %v39_v37 = vadd.s32 120, %v651_v1 }
  0x28   :  { %554 = vmatpush3.bf16.msk.msra.mxu1 %vm553_vm3, %v625_v13  ;;  %524 = vmatprep.subr.msk.bf16.mxu0 %vm523_vm6, %v625_v13  ;;  %vm525_vm11 = vmpackc.low %vm68_vm2, %vm67_vm0  ;;  %vm151_vm0 = vcmp.eq.s32.totalorder %v51_v27, %v668_v11  ;;  %vm134_vm3 = vcmp.eq.s32.totalorder %v34_v28, %v668_v11  ;;  %vm87_vm6 = vcmp.eq.s32.totalorder %v52_v30, %v655_v5 }
  0x29   :  { %526 = vmatpush3.bf16.msk.msra.mxu0 %vm525_vm11, %v625_v13  ;;  %vm555_vm7 = vmpackc.low %vm149_vm5, %vm148_vm4  ;;  %vm135_vm4 = vcmp.eq.s32.totalorder %v35_v29, %v668_v11  ;;  %vm88_vm11 = vcmp.eq.s32.totalorder %v53_v31, %v655_v5 }
  0x2a   :  { %556 = vmatprep.subr.msk.bf16.mxu1 %vm555_vm7, %v625_v13  ;;  %vm557_vm1 = vmpackc.low %vm133_vm10, %vm132_vm8  ;;  %vm71_vm10 = vcmp.eq.s32.totalorder %v36_v32, %v655_v5  ;;  %vm152_vm7 = vcmp.eq.s32.totalorder %v52_v30, %v668_v11 }
  0x2b   :  { %vm527_vm2 = vmpackc.low %vm86_vm13, %vm85_vm12  ;;  %vm72_vm12 = vcmp.eq.s32.totalorder %v37_v33, %v655_v5 }
  0x2c   :  { %558 = vmatpush3.bf16.msk.msra.mxu1 %vm557_vm1, %v625_v13  ;;  %528 = vmatprep.subr.msk.bf16.mxu0 %vm527_vm2, %v625_v13  ;;  %vm529_vm5 = vmpackc.low %vm70_vm14, %vm69_vm9  ;;  %vm153_vm9 = vcmp.eq.s32.totalorder %v53_v31, %v668_v11  ;;  %vm136_vm1 = vcmp.eq.s32.totalorder %v36_v32, %v668_v11  ;;  %vm89_vm2 = vcmp.eq.s32.totalorder %v54_v34, %v655_v5 }
  0x2d   :  { %530 = vmatpush3.bf16.msk.msra.mxu0 %vm529_vm5, %v625_v13  ;;  %vm559_vm8 = vmpackc.low %vm151_vm0, %vm150_vm15  ;;  %vm137_vm15 = vcmp.eq.s32.totalorder %v37_v33, %v668_v11  ;;  %vm90_vm5 = vcmp.eq.s32.totalorder %v55_v35, %v655_v5 }
  0x2e   :  { %560 = vmatprep.subr.msk.bf16.mxu1 %vm559_vm8, %v625_v13  ;;  %vm561_vm13 = vmpackc.low %vm135_vm4, %vm134_vm3  ;;  %vm73_vm4 = vcmp.eq.s32.totalorder %v38_v36, %v655_v5  ;;  %vm154_vm8 = vcmp.eq.s32.totalorder %v54_v34, %v668_v11 }
  0x2f   :  { %vm531_vm14 = vmpackc.low %vm88_vm11, %vm87_vm6  ;;  %vm74_vm6 = vcmp.eq.s32.totalorder %v39_v37, %v655_v5 }
  0x30   :  { %562 = vmatpush3.bf16.msk.msra.mxu1 %vm561_vm13, %v625_v13  ;;  %532 = vmatprep.subr.msk.bf16.mxu0 %vm531_vm14, %v625_v13  ;;  %vm533_vm0 = vmpackc.low %vm72_vm12, %vm71_vm10  ;;  %vm155_vm13 = vcmp.eq.s32.totalorder %v55_v35, %v668_v11  ;;  %vm138_vm10 = vcmp.eq.s32.totalorder %v38_v36, %v668_v11  ;;  %vm139_vm12 = vcmp.eq.s32.totalorder %v39_v37, %v668_v11 }
  0x31   :  { %534 = vmatpush3.bf16.msk.msra.mxu0 %vm533_vm0, %v625_v13  ;;  %vm563_vm3 = vmpackc.low %vm153_vm9, %vm152_vm7 }
  0x32   :  { %564 = vmatprep.subr.msk.bf16.mxu1 %vm563_vm3, %v625_v13  ;;  %vm565_vm11 = vmpackc.low %vm137_vm15, %vm136_vm1 }
  0x33   :  { %vm535_vm14 = vmpackc.low %vm90_vm5, %vm89_vm2 }
  0x34   :  { %566 = vmatpush3.bf16.msk.msra.mxu1 %vm565_vm11, %v625_v13  ;;  %536 = vmatprep.subr.msk.bf16.mxu0 %vm535_vm14, %v625_v13  ;;  %vm537_vm7 = vmpackc.low %vm74_vm6, %vm73_vm4 }
  0x35   :  { %538 = vmatpush3.bf16.msk.msra.mxu0 %vm537_vm7, %v625_v13  ;;  %vm567_vm9 = vmpackc.low %vm155_vm13, %vm154_vm8 }
  0x36   :  { %568 = vmatprep.subr.msk.bf16.mxu1 %vm567_vm9, %v625_v13  ;;  %vm569_vm1 = vmpackc.low %vm139_vm12, %vm138_vm10 }
  0x38   :  { %570 = vmatpush3.bf16.msk.msra.mxu1 %vm569_vm1, %v625_v13  ;;  %253 = vmatmul.mubr.f32.vlgmr.msra.gmra.mrb[0].mxu0 %v21_v38 }
  0x3b   :  { %323 = vmatmul.mubr.f32.vlgmr.msra.gmra.mrb[0].mxu1 %v21_v38 }
 0x10b   :  { %v469_v39 = vpop.f32.mrb[0].mxu0 }
 0x10c   :  { %v470_v40 = vpop.f32.mrb[1].mxu0 }
 0x10d   :  { %v471_v41 = vadd.f32 %v470_v40, %v469_v39 }
 0x10e   :  { %v504_v42 = vpop.f32.mrb[0].mxu1 }
 0x10f   :  { %v328_v43 = vsub.f32 10.0, %v471_v41  ;;  %v505_v44 = vpop.f32.mrb[1].mxu1  ;;  %v340_v56 = vmul.f32 -0.84729785, %v471_v41 }
 0x110   :  { %v506_v45 = vadd.f32 %v505_v44, %v504_v42 }
 0x111   :  { %v329_v46 = vmin.f32 %v471_v41, %v328_v43 }
 0x112   :  { %v342_v47 = vsub.f32 10.0, %v506_v45  ;;  %v354_v60 = vmul.f32 0.4054651, %v506_v45 }
 0x113   :  { %vm330_vm15 = vcmp.ge.f32.partialorder %v329_v46, 0.5  ;;  %vm332_vm0 = vcmp.ge.f32.partialorder %v329_v46, 1.5  ;;  %vm334_vm2 = vcmp.ge.f32.partialorder %v329_v46, 2.5  ;;  %vm336_vm5 = vcmp.ge.f32.partialorder %v329_v46, 3.5 }
 0x114   :  { %v343_v48 = vmin.f32 %v506_v45, %v342_v47  ;;  %v331_v50 = vsel %vm330_vm15, -1.2641643, %v626_v49  ;;  %vm338_vm6 = vcmp.ge.f32.partialorder %v329_v46, 4.5 }
 0x115   :  { %v333_v51 = vsel %vm332_vm0, 0.23991305, %v331_v50 }
 0x116   :  { %v335_v52 = vsel %vm334_vm2, 1.2207423, %v333_v51  ;;  %vm344_vm3 = vcmp.ge.f32.partialorder %v343_v48, 0.5  ;;  %vm346_vm4 = vcmp.ge.f32.partialorder %v343_v48, 1.5  ;;  %vm348_vm11 = vcmp.ge.f32.partialorder %v343_v48, 2.5 }
 0x117   :  { %v337_v53 = vsel %vm336_vm5, 1.7803581, %v335_v52  ;;  %v345_v55 = vsel %vm344_vm3, -6.860322, %v627_v54  ;;  %vm350_vm8 = vcmp.ge.f32.partialorder %v343_v48, 3.5  ;;  %vm352_vm13 = vcmp.ge.f32.partialorder %v343_v48, 4.5 }
 0x118   :  { %v347_v57 = vsel %vm346_vm4, -5.356245, %v345_v55  ;;  %v339_v58 = vsel %vm338_vm6, 1.9626796, %v337_v53 }
 0x119   :  { %v349_v59 = vsel %vm348_vm11, -4.375416, %v347_v57  ;;  %v341_v63 = vadd.f32 %v340_v56, %v339_v58 }
 0x11a   :  { %v351_v61 = vsel %vm350_vm8, -3.8157997, %v349_v59 }
 0x11b   :  { %v353_v62 = vsel %vm352_vm13, -3.6334782, %v351_v61 }
 0x11c   :  { %v355_v0 = vadd.f32 %v354_v60, %v353_v62 }
 0x11e   :  { %v356_v1 = vadd.f32 %v355_v0, %v341_v63 }
 0x120   :  { %357 = vst [vmem:[#allocation5] sm:$0xff] %v356_v1 }
 0x121   :  { %609 = shalt.err (!%p606_p12)
}
 0x122   :  { %s610_s22 = scalar_lea.hbm %s828_s1, 128 }
 0x123   :  { %p611_p13 = scmp.ne.s32.totalorder %s828_s1, %s610_s22  ;;  %p614_p0 = scmp.lt.u32.totalorder %s610_s22, %s828_s1 }
 0x125   :  { %p616_p1 = pnand %p614_p0, %p611_p13 }
 0x127   :  { %619 = shalt.err (!%p616_p1)
}
 0x128   :  { %367 = dma.vmem_to_hbm [thread:$0]  %s365_s18, 128, %s828_s1, [#allocation4]  }
 0x129   :  { %622 = dma.done.wait [#allocation4], 128  }
 0x12a   :  { %623 = vsyncadd [#allocation4], 4294967168 }
 0x12b   :  { %371 = vsyncpa [#allocation3], 1 }
 0x12c   :  { %372 = vsyncpa [#allocation4], 1 }

</bundles_post_ra>
